<compile_context>
chip_gen: v7x
topology: tpu7x:2x2x1
jax: 0.10.0
libtpu: 0.0.40
codegen_flags: <defaults>
</compile_context>

<pallas_src>
import math

import jax
import jax.numpy as jnp
from jax import lax
from jax.experimental import pallas as pl
from jax.experimental.pallas import tpu as pltpu


def _make_spfusion_kernel(height: int, C: int, d: int, HW: int, bt: int, chunk: int):
    inv_hw = 1.0 / float(HW)
    n_full = HW // chunk
    tail = HW - n_full * chunk

    def spfusion_kernel(*refs):
        x_refs = refs[:height]              # each (bt, C, HW)
        w1_ref = refs[height]               # (C, d)        == conv1 weight, transposed
        w2_ref = refs[height + 1]           # (height, d, C) == conv2 weight, per branch
        o_ref = refs[height + 2]            # (bt, C, HW)

        # ---- pass 1: pooled = mean over HW of the branch sum (f32), chunked
        #      so only a few vregs of f32 temporaries are ever live. ----
        def p1_chunk(sl, acc):
            for h in range(height):
                acc = acc + jnp.sum(x_refs[h][:, :, sl].astype(jnp.float32), axis=-1)
            return acc

        pooled = jnp.zeros((bt, C), jnp.float32)
        if n_full > 0:
            def p1_body(i, acc):
                start = pl.multiple_of(i * chunk, chunk)
                return p1_chunk(pl.ds(start, chunk), acc)
            pooled = lax.fori_loop(0, n_full, p1_body, pooled, unroll=n_full <= 8)
        if tail > 0:
            pooled = p1_chunk(pl.ds(n_full * chunk, tail), pooled)
        pooled = pooled * inv_hw            # (bt, C) == AdaptiveAvgPool2d(1)

        # ---- tiny MLP: conv1x1 -> relu -> conv1x1; w2 pre-split per branch so
        #      the softmax never slices lanes at non-128 offsets ----
        h1 = jnp.maximum(
            jnp.dot(pooled, w1_ref[...], preferred_element_type=jnp.float32), 0.0
        )                                   # (bt, d)
        logits = [
            jnp.dot(h1, w2_ref[h], preferred_element_type=jnp.float32)
            for h in range(height)
        ]                                   # each (bt, C)

        # ---- softmax over the branch axis (exact reciprocal: tiny tensor) ----
        m = logits[0]
        for lg in logits[1:]:
            m = jnp.maximum(m, lg)
        es = [jnp.exp(lg - m) for lg in logits]
        denom = es[0]
        for e in es[1:]:
            denom = denom + e
        inv = pl.reciprocal(denom)
        scales = [(e * inv)[:, :, None] for e in es]     # (bt, C, 1), hoisted

        # ---- pass 2: attention-weighted sum, re-reading branch tiles from
        #      VMEM chunk-by-chunk and storing each output chunk directly ----
        # TODO(synk): on v6e/v7x with bf16 inputs this multiply-add could run in
        # bf16 (cast scales once per branch) to halve VALU work; kept f32 for
        # accuracy and v5e compatibility.
        def p2_chunk(sl):
            out = x_refs[0][:, :, sl].astype(jnp.float32) * scales[0]
            for h in range(1, height):
                out = out + x_refs[h][:, :, sl].astype(jnp.float32) * scales[h]
            o_ref[:, :, sl] = out.astype(o_ref.dtype)

        if n_full > 0:
            @pl.loop(0, n_full, unroll=n_full <= 8)
            def _(i):
                start = pl.multiple_of(i * chunk, chunk)
                p2_chunk(pl.ds(start, chunk))
        if tail > 0:
            p2_chunk(pl.ds(n_full * chunk, tail))

    return spfusion_kernel


def spfusion_pallas(feats_list, w1, w2, *, chunk=512):
    """feats_list: list of `height` arrays, each (B, C, H, W); returns (B, C, H, W)."""
    B, C, H, W = feats_list[0].shape
    height = len(feats_list)
    d = w1.shape[0]
    HW = H * W
    dtype = feats_list[0].dtype
    itemsize = jnp.dtype(dtype).itemsize

    # Free, contiguous reshapes. No padding / no post-call slice: the block's
    # last two dims equal the full array dims, which the (8,128) rule permits.
    xs = [f.reshape(B, C, HW) for f in feats_list]

    # Tiny weights, reorganized once outside the kernel.
    w1_t = jnp.transpose(w1)                                     # (C, d)
    w2_t = jnp.transpose(w2.reshape(height, C, d), (0, 2, 1))    # (height, d, C)

    # ---- per-generation VMEM budgeting ----
    try:
        vmem_cap = int(pltpu.get_tpu_info().vmem_capacity_bytes)
    except Exception:
        vmem_cap = 64 * 1024 * 1024                   # conservative fallback
    if vmem_cap <= 64 * 1024 * 1024:                  # v7x-class: 64 MiB / TC
        budget = 7 * 1024 * 1024                      # single-buffer block budget
        vmem_limit = 36 * 1024 * 1024
    else:                                             # v5e / v6e: 128 MiB
        budget = 24 * 1024 * 1024
        vmem_limit = 96 * 1024 * 1024

    # Per-batch-element footprint: height input blocks + 1 output block
    # (Pallas double-buffers those), plus the small f32 chunk temporaries of
    # the two chunked passes.
    chunk_live = min(chunk, HW)
    per_batch = (height + 1) * C * HW * itemsize + (height + 2) * C * chunk_live * 4
    bt = max(1, budget // per_batch)
    min_steps = 4 if B >= 4 else B                    # >= 2 steps per TC on v7x
    bt = min(bt, max(1, B // max(1, min_steps)))
    bt = min(bt, B)

    grid = (pl.cdiv(B, bt),)                          # masked last block; no fixup loop
    kernel = _make_spfusion_kernel(height, C, d, HW, bt, chunk)

    in_specs = [pl.BlockSpec((bt, C, HW), lambda b: (b, 0, 0)) for _ in range(height)]
    in_specs += [
        pl.BlockSpec((C, d), lambda b: (0, 0)),
        pl.BlockSpec((height, d, C), lambda b: (0, 0, 0)),
    ]

    cost = pl.CostEstimate(
        flops=3 * height * B * C * HW,
        transcendentals=height * B * C,
        bytes_accessed=(height + 1) * B * C * HW * itemsize
        + int(w1_t.size) * 4 + int(w2_t.size) * 4,
    )

    out = pl.pallas_call(
        kernel,
        out_shape=jax.ShapeDtypeStruct((B, C, HW), dtype),
        grid=grid,
        in_specs=in_specs,
        out_specs=pl.BlockSpec((bt, C, HW), lambda b: (b, 0, 0)),
        compiler_params=pltpu.CompilerParams(
            dimension_semantics=("parallel",),
            vmem_limit_bytes=vmem_limit,
        ),
        cost_estimate=cost,
    )(*xs, w1_t, w2_t)

    return out.reshape(B, C, H, W)


def spfusion_ref(feats_list, w1, w2):
    """Pure-JAX reference matching the PyTorch forward exactly."""
    B, C, H, W = feats_list[0].shape
    height = len(feats_list)
    x = jnp.stack(feats_list, axis=1)                     # (B, height, C, H, W)
    feats_sum = jnp.sum(x, axis=1)                        # (B, C, H, W)
    pooled = jnp.mean(feats_sum, axis=(2, 3))             # (B, C)
    h1 = jax.nn.relu(jnp.dot(pooled, w1.T, precision=jax.lax.Precision.HIGHEST))
    logits = jnp.dot(h1, w2.T, precision=jax.lax.Precision.HIGHEST)
    attn = jax.nn.softmax(logits.reshape(B, height, C), axis=1)
    return jnp.sum(x * attn[:, :, :, None, None], axis=1)


if __name__ == "__main__":
    # Small shapes consistent with the module: dim=C=32 -> d = max(32/8, 4) = 4
    B, C, H, W = 2, 32, 16, 16
    height, reduction = 2, 8
    d = max(C // reduction, 4)

    key = jax.random.PRNGKey(0)
    k1, k2, k3, k4 = jax.random.split(key, 4)

    # Deterministic synthetic weights (kaiming-uniform-like bounds, bias=False)
    b1 = 1.0 / math.sqrt(C)
    b2 = 1.0 / math.sqrt(d)
    w1 = jax.random.uniform(k1, (d, C), jnp.float32, -b1, b1)           # Conv2d(dim, d, 1)
    w2 = jax.random.uniform(k2, (height * C, d), jnp.float32, -b2, b2)  # Conv2d(d, dim*height, 1)

    feats = [
        jax.random.normal(k3, (B, C, H, W), jnp.float32),
        jax.random.normal(k4, (B, C, H, W), jnp.float32),
    ]

    out = jax.block_until_ready(spfusion_pallas(feats, w1, w2))
    ref = jax.block_until_ready(spfusion_ref(feats, w1, w2))

    assert out.shape == (B, C, H, W)
    err = float(jnp.max(jnp.abs(out - ref)))
    assert jnp.allclose(out, ref, atol=1e-3, rtol=1e-3), err
    print("KERNEL_OK")
</pallas_src>

<mosaic_0001>
module attributes {stable_mosaic.version = 11 : i64} {
  func.func @spfusion_kernel(%arg0: i32, %arg1: memref<1x32x256xf32, #tpu.memory_space<vmem>>, %arg2: memref<1x32x256xf32, #tpu.memory_space<vmem>>, %arg3: memref<32x4xf32, #tpu.memory_space<vmem>>, %arg4: memref<2x4x32xf32, #tpu.memory_space<vmem>>, %arg5: memref<1x32x256xf32, #tpu.memory_space<vmem>>) attributes {dimension_semantics = [#tpu.dimension_semantics<parallel>], iteration_bounds = array<i64: 2>, scalar_prefetch = 0 : i64, scratch_operands = 0 : i64, tpu.core_type = #tpu.core_type<tc>, window_params = [{transform_indices = @transform_0, window_bounds = array<i64: 1, 32, 256>}, {transform_indices = @transform_1, window_bounds = array<i64: 1, 32, 256>}, {pipeline_mode = #tpu.pipeline_mode<synchronous>, transform_indices = @transform_2, window_bounds = array<i64: 32, 4>}, {pipeline_mode = #tpu.pipeline_mode<synchronous>, transform_indices = @transform_3, window_bounds = array<i64: 2, 4, 32>}, {transform_indices = @transform_4, window_bounds = array<i64: 1, 32, 256>}]} {
    %cst = arith.constant 0.000000e+00 : f32
    %0 = vector.broadcast %cst : f32 to vector<1x32xf32>
    %c0 = arith.constant 0 : index
    %c0_0 = arith.constant 0 : index
    %c0_1 = arith.constant 0 : index
    %1 = vector.load %arg1[%c0, %c0_0, %c0_1] : memref<1x32x256xf32, #tpu.memory_space<vmem>>, vector<1x32x256xf32>
    %cst_2 = arith.constant dense<0.000000e+00> : vector<1x32xf32>
    %2 = vector.multi_reduction <add>, %1, %cst_2 [2] : vector<1x32x256xf32> to vector<1x32xf32>
    %3 = arith.addf %0, %2 : vector<1x32xf32>
    %c0_3 = arith.constant 0 : index
    %c0_4 = arith.constant 0 : index
    %c0_5 = arith.constant 0 : index
    %4 = vector.load %arg2[%c0_3, %c0_4, %c0_5] : memref<1x32x256xf32, #tpu.memory_space<vmem>>, vector<1x32x256xf32>
    %cst_6 = arith.constant dense<0.000000e+00> : vector<1x32xf32>
    %5 = vector.multi_reduction <add>, %4, %cst_6 [2] : vector<1x32x256xf32> to vector<1x32xf32>
    %6 = arith.addf %3, %5 : vector<1x32xf32>
    %cst_7 = arith.constant 3.906250e-03 : f32
    %7 = vector.broadcast %cst_7 : f32 to vector<1x32xf32>
    %8 = arith.mulf %6, %7 : vector<1x32xf32>
    %c0_8 = arith.constant 0 : index
    %c0_9 = arith.constant 0 : index
    %9 = vector.load %arg3[%c0_8, %c0_9] : memref<32x4xf32, #tpu.memory_space<vmem>>, vector<32x4xf32>
    %cst_10 = arith.constant dense<0.000000e+00> : vector<1x4xf32>
    %10 = tpu.matmul %8, %9, %cst_10 {dimension_numbers = #tpu.dot_dimension_numbers<[1], [0], [0], [1], [0, 0, 1, 1], [], []>} : vector<1x32xf32>, vector<32x4xf32>, vector<1x4xf32> -> vector<1x4xf32>
    %cst_11 = arith.constant 0.000000e+00 : f32
    %11 = vector.broadcast %cst_11 : f32 to vector<1x4xf32>
    %12 = arith.maximumf %10, %11 : vector<1x4xf32>
    %c0_12 = arith.constant 0 : index
    %c0_13 = arith.constant 0 : index
    %c0_14 = arith.constant 0 : index
    %13 = vector.load %arg4[%c0_12, %c0_13, %c0_14] : memref<2x4x32xf32, #tpu.memory_space<vmem>>, vector<1x4x32xf32>
    %14 = vector.shape_cast %13 : vector<1x4x32xf32> to vector<4x32xf32>
    %cst_15 = arith.constant dense<0.000000e+00> : vector<1x32xf32>
    %15 = tpu.matmul %12, %14, %cst_15 {dimension_numbers = #tpu.dot_dimension_numbers<[1], [0], [0], [1], [0, 0, 1, 1], [], []>} : vector<1x4xf32>, vector<4x32xf32>, vector<1x32xf32> -> vector<1x32xf32>
    %c1 = arith.constant 1 : index
    %c0_16 = arith.constant 0 : index
    %c0_17 = arith.constant 0 : index
    %16 = vector.load %arg4[%c1, %c0_16, %c0_17] : memref<2x4x32xf32, #tpu.memory_space<vmem>>, vector<1x4x32xf32>
    %17 = vector.shape_cast %16 : vector<1x4x32xf32> to vector<4x32xf32>
    %cst_18 = arith.constant dense<0.000000e+00> : vector<1x32xf32>
    %18 = tpu.matmul %12, %17, %cst_18 {dimension_numbers = #tpu.dot_dimension_numbers<[1], [0], [0], [1], [0, 0, 1, 1], [], []>} : vector<1x4xf32>, vector<4x32xf32>, vector<1x32xf32> -> vector<1x32xf32>
    %19 = arith.maximumf %15, %18 : vector<1x32xf32>
    %20 = arith.subf %15, %19 : vector<1x32xf32>
    %21 = math.exp %20 : vector<1x32xf32>
    %22 = arith.subf %18, %19 : vector<1x32xf32>
    %23 = math.exp %22 : vector<1x32xf32>
    %24 = arith.addf %21, %23 : vector<1x32xf32>
    %25 = tpu.reciprocal %24 : vector<1x32xf32> -> vector<1x32xf32>
    %26 = arith.mulf %21, %25 : vector<1x32xf32>
    %27 = vector.shape_cast %26 : vector<1x32xf32> to vector<1x32x1xf32>
    %28 = arith.mulf %23, %25 : vector<1x32xf32>
    %29 = vector.shape_cast %28 : vector<1x32xf32> to vector<1x32x1xf32>
    %c0_19 = arith.constant 0 : index
    %c0_20 = arith.constant 0 : index
    %c0_21 = arith.constant 0 : index
    %30 = vector.load %arg1[%c0_19, %c0_20, %c0_21] : memref<1x32x256xf32, #tpu.memory_space<vmem>>, vector<1x32x256xf32>
    %31 = vector.broadcast %27 : vector<1x32x1xf32> to vector<1x32x256xf32>
    %32 = arith.mulf %30, %31 : vector<1x32x256xf32>
    %c0_22 = arith.constant 0 : index
    %c0_23 = arith.constant 0 : index
    %c0_24 = arith.constant 0 : index
    %33 = vector.load %arg2[%c0_22, %c0_23, %c0_24] : memref<1x32x256xf32, #tpu.memory_space<vmem>>, vector<1x32x256xf32>
    %34 = vector.broadcast %29 : vector<1x32x1xf32> to vector<1x32x256xf32>
    %35 = arith.mulf %33, %34 : vector<1x32x256xf32>
    %36 = arith.addf %32, %35 : vector<1x32x256xf32>
    %c0_25 = arith.constant 0 : index
    %c0_26 = arith.constant 0 : index
    %c0_27 = arith.constant 0 : index
    %37 = vector.load %arg5[%c0_25, %c0_26, %c0_27] : memref<1x32x256xf32, #tpu.memory_space<vmem>>, vector<1x32x256xf32>
    tpu.vector_store %arg5[%c0_25, %c0_26, %c0_27], %36 {strides = array<i32>} : memref<1x32x256xf32, #tpu.memory_space<vmem>>, vector<1x32x256xf32>,
    return
  }
  func.func @transform_0(%arg0: i32) -> (i32, i32, i32) {
    %c0_i32 = arith.constant 0 : i32
    %c0_i32_0 = arith.constant 0 : i32
    %c0_i32_1 = arith.constant 0 : i32
    return %arg0, %c0_i32, %c0_i32_0 : i32, i32, i32
  }
  func.func @transform_1(%arg0: i32) -> (i32, i32, i32) {
    %c0_i32 = arith.constant 0 : i32
    %c0_i32_0 = arith.constant 0 : i32
    %c0_i32_1 = arith.constant 0 : i32
    return %arg0, %c0_i32, %c0_i32_0 : i32, i32, i32
  }
  func.func @transform_2(%arg0: i32) -> (i32, i32) {
    %c0_i32 = arith.constant 0 : i32
    %c0_i32_0 = arith.constant 0 : i32
    %c0_i32_1 = arith.constant 0 : i32
    return %c0_i32, %c0_i32_0 : i32, i32
  }
  func.func @transform_3(%arg0: i32) -> (i32, i32, i32) {
    %c0_i32 = arith.constant 0 : i32
    %c0_i32_0 = arith.constant 0 : i32
    %c0_i32_1 = arith.constant 0 : i32
    %c0_i32_2 = arith.constant 0 : i32
    return %c0_i32, %c0_i32_0, %c0_i32_1 : i32, i32, i32
  }
  func.func @transform_4(%arg0: i32) -> (i32, i32, i32) {
    %c0_i32 = arith.constant 0 : i32
    %c0_i32_0 = arith.constant 0 : i32
    %c0_i32_1 = arith.constant 0 : i32
    return %arg0, %c0_i32, %c0_i32_0 : i32, i32, i32
  }
}

</mosaic_0001>

<bundles_post_ra>
// kernel: tpu_custom_call.1
= control target key start
LH: loop header
LB: loop body
LE: loop exit
PB: predicated region body
PF: predicated region fallthrough
CT: control target
= control target key end

     0   :  { %9 = vsyncpa [#allocation3], 0  ;;  %s1386_s0 = inlined_call_operand.hbm [shape: f32[2,32,256], index: 0, kind: input, shape index: {}]   ;;  %s1387_s1 = inlined_call_operand.hbm [shape: f32[2,32,256], index: 1, kind: input, shape index: {}]   ;;  %s1388_s2 = inlined_call_operand.vmem [shape: f32[32,4], index: 2, kind: input, shape index: {}]   ;;  %s1389_s3 = inlined_call_operand.vmem [shape: f32[2,4,32], index: 3, kind: input, shape index: {}]   ;;  %s1390_s4 = inlined_call_operand.hbm [shape: f32[2,32,256], index: 4, kind: output, shape index: {}]  }
   0x1   :  { %11 = vsyncpa [#allocation3 + $0x1], 0 }
   0x2   :  { %12 = vsyncpa [#allocation6], 0 }
   0x3   :  { %14 = vsyncpa [#allocation6 + $0x1], 0 }
   0x4   :  { %15 = vsyncpa [#allocation4], 0 }
   0x5   :  { %17 = vsyncpa [#allocation4 + $0x1], 0  ;;  %s1056_s15 = smov 0   ;;  %s1058_s16 = smov 0  }
   0x6   :  { %s1060_s17 = smov 0   ;;  %s1062_s18 = smov 0  }
   0x7 LB: > { %s1077_s19 = sadd.s32 4294967295, %s1019_s18   ;;  %s762_s20 = sadd.s32 4294967294, %s1019_s18   ;;  %s1019_s18 = sphi %s1062_s18, %s1406_s18   ;;  %s1015_s17 = sphi %s1060_s17, %s1405_s17   ;;  %s1011_s16 = sphi %s1058_s16, %s1404_s16   ;;  %s1007_s15 = sphi %s1056_s15, %s1403_s15  }
   0x8   : > { %s1081_s21 = sadd.s32 1, %s1019_s18   ;;  %s30_s22 = sadd.s32 1, %s1015_s17 }
   0x9   : > { %s27_s23 = ssub.s32 %s1019_s18, %s1081_s21  ;;  %p37_p0 = scmp.ne.s32.totalorder %s1015_s17, %s1011_s16 }
   0xa   : > { %p28_p1 = scmp.eq.s32.totalorder %s27_s23, 0  ;;  %p38_p2 = scmp.eq.s32.totalorder %s1019_s18, 0 }
   0xb   : > { %p43_p3 = scmp.ne.s32.totalorder %s1011_s16, %s1007_s15  ;;  %p44_p4 = scmp.eq.s32.totalorder %s1077_s19, 0 }
   0xc   : > { %s1093_s24 = scalar_select %p28_p1, %s1015_s17, %s30_s22  }
   0xd   : > { %p1095_p5 = por %p38_p2, %p37_p0  ;;  %p1099_p6 = por %p44_p4, %p43_p3 }
   0xe   : > { %p135_p7 = scmp.eq.s32.totalorder %s1077_s19, 1  ;;  %p141_p8 = scmp.eq.s32.totalorder %s762_s20, 1 }
   0xf   : > { %s1394_s26 = scalar_select %p1099_p6, 1, 0 }
  0x10   : > { %p842_p10 = scmp.lt.s32.totalorder %s1019_s18, 2  ;;  %p1106_p11 = por %p135_p7, %p37_p0 }
  0x11   : > { %p1110_p12 = por %p141_p8, %p43_p3  ;;  %s1115_s29 = sand.u32 1, %s1015_s17  }
  0x12   : > { %s1395_s27 = scalar_select %p1106_p11, 1, 0 }
  0x13   : > { %s1396_s28 = scalar_select %p1110_p12, 1, 0 }
  0x14   : > { %s786_s30 = sshll.u32 %s1019_s18, 10  ;;  %s765_s5 = sshll.u32 %s1115_s29, 6 }
  0x15   : > { %s1124_s8 = scalar_lea.hbm %s1386_s0, %s786_s30  ;;  %s171_s9 = scalar_lea.vmem [#allocation2], %s765_s5 }
  0x16   : > { %s178_s10 = sshll.u32 %s171_s9, 4  ;;  %p1130_p13 = pnand %p842_p10, %p1095_p5  ;;  %s1134_s10 = int_to_ptr.vmem [resolvable:$true] %s178_s10 }
  0x17   : > { %s168_s12 = scalar_lea.sflag [#allocation3], %s1115_s29  ;;  %s889_s13 = scalar_lea.hbm %s1124_s8, 1024 }
  0x18   : > { %p890_p0 = scmp.ne.s32.totalorder %s1124_s8, %s889_s13  ;;  %p891_p1 = pneg %p1130_p13 }
  0x19   : > { %s894_s22 = scalar_lea.hbm %s1386_s0, 2048  ;;  %p895_p4 = scmp.lt.u32.totalorder %s1124_s8, %s1386_s0 }
  0x1a   : > { %p892_p2 = pnand %p891_p1, %p890_p0  ;;  %p896_p5 = scmp.lt.u32.totalorder %s894_s22, %s889_s13 }
  0x1b   : > { %p898_p8 = scmp.lt.u32.totalorder %s889_s13, %s1124_s8 }
  0x1c   : > { %p893_p3 = pneg %p892_p2  ;;  %p897_p7 = por %p896_p5, %p895_p4 }
  0x1e   : > { %p899_p10 = por %p898_p8, %p897_p7 }
  0x20   : > { %p900_p9 = pnand %p899_p10, %p893_p3 }
  0x22   : > { %903 = shalt.err (!%p900_p9)
}
  0x23   : > { %s904_s6 = scalar_lea.vmem %s1134_s10, 1024  ;;  %s1021_s7 = smov [#allocation2]  }
  0x24   : > { %p905_p0 = scmp.ne.s32.totalorder %s1134_s10, %s904_s6  ;;  %s909_s9 = sshll.u32 %s1021_s7, 4  ;;  %s910_s9 = int_to_ptr.vmem [resolvable:$false] %s909_s9 }
  0x25   : > { %s911_s14 = scalar_lea.vmem %s910_s9, 2048  ;;  %p912_p11 = scmp.lt.s32.totalorder %s1134_s10, %s910_s9 }
  0x26   : > { %p907_p2 = pnand %p905_p0, %p891_p1  ;;  %p913_p4 = scmp.lt.s32.totalorder %s911_s14, %s904_s6 }
  0x28   : > { %p908_p12 = pneg %p907_p2  ;;  %p914_p5 = por %p913_p4, %p912_p11 }
  0x2a   : > { %p915_p7 = pnand %p914_p5, %p908_p12 }
  0x2c   : > { %918 = shalt.err (!%p915_p7)
}
  0x2d   : > { %s1022_s13 = smov 256   ;;  %s1023_s20 = smov 16  }
  0x2e   : > { %834 = dma.hbm_to_vmem [thread:$0]  (!%p1130_p13), %s1124_s8, 1024, %s1134_s10, %s168_s12, %s1022_s13, %s1022_s13, %s1023_s20  }
  0x2f   : > { %p771_p9 = scmp.ge.s32.totalorder %s1019_s18, 1  ;;  %p207_p11 = scmp.lt.s32.totalorder %s1019_s18, 3 }
  0x30   : > { %s1178_s6 = scalar_lea.hbm %s1387_s1, %s786_s30  ;;  %s192_s7 = scalar_lea.vmem [#allocation5], %s765_s5 }
  0x31   : > { %p1169_p12 = pnand %p771_p9, %p207_p11  ;;  %s199_s9 = sshll.u32 %s192_s7, 4  ;;  %s1182_s9 = int_to_ptr.vmem [resolvable:$true] %s199_s9 }
  0x32   : > { %s189_s8 = scalar_lea.sflag [#allocation6], %s1115_s29  ;;  %s919_s10 = scalar_lea.hbm %s1178_s6, 1024 }
  0x33   : > { %p920_p3 = scmp.ne.s32.totalorder %s1178_s6, %s919_s10  ;;  %s924_s30 = scalar_lea.hbm %s1387_s1, 2048 }
  0x34   : > { %p925_p0 = scmp.lt.u32.totalorder %s1178_s6, %s1387_s1  ;;  %p926_p2 = scmp.lt.u32.totalorder %s924_s30, %s919_s10 }
  0x35   : > { %p922_p8 = pnand %p920_p3, %p891_p1  ;;  %p928_p5 = scmp.lt.u32.totalorder %s919_s10, %s1178_s6 }
  0x36   : > { %p927_p4 = por %p926_p2, %p925_p0 }
  0x37   : > { %p923_p10 = pneg %p922_p8 }
  0x38   : > { %p929_p7 = por %p928_p5, %p927_p4 }
  0x3a   : > { %p930_p9 = pnand %p929_p7, %p923_p10 }
  0x3c   : > { %933 = shalt.err (!%p930_p9)
}
  0x3d   : > { %s934_s5 = scalar_lea.vmem %s1182_s9, 1024  ;;  %s1024_s7 = smov [#allocation5]  }
  0x3e   : > { %p935_p11 = scmp.ne.s32.totalorder %s1182_s9, %s934_s5  ;;  %s939_s12 = sshll.u32 %s1024_s7, 4  ;;  %s940_s12 = int_to_ptr.vmem [resolvable:$false] %s939_s12 }
  0x3f   : > { %s941_s14 = scalar_lea.vmem %s940_s12, 2048  ;;  %p942_p6 = scmp.lt.s32.totalorder %s1182_s9, %s940_s12 }
  0x40   : > { %p937_p3 = pnand %p935_p11, %p891_p1  ;;  %p943_p0 = scmp.lt.s32.totalorder %s941_s14, %s934_s5 }
  0x42   : > { %p938_p8 = pneg %p937_p3  ;;  %p944_p2 = por %p943_p0, %p942_p6 }
  0x44   : > { %p945_p4 = pnand %p944_p2, %p938_p8 }
  0x46   : > { %948 = shalt.err (!%p945_p4)
}
  0x47   : > { %837 = dma.hbm_to_vmem [thread:$0]  (!%p1130_p13), %s1178_s6, 1024, %s1182_s9, %s189_s8, %s1022_s13, %s1022_s13, %s1023_s20  }
  0x48   : > { %211 = sbr.rel (%p1169_p12) target bundleno = 862 (0x35e), region = 36  ;;  %s1216_s10 = sand.u32 (!%p1169_p12), 1, %s1011_s16  }
  0x49   : > { %s1219_s30 = sshll.u32 (!%p1169_p12), %s1216_s10, 6  ;;  %s214_s11 = scalar_lea.sflag (!%p1169_p12), [#allocation3], %s1216_s10 }
  0x4a   : > { %s1223_s23 = scalar_lea.vmem (!%p1169_p12), [#allocation2], %s1219_s30  ;;  %p1399_p6 = scmp.ne.s32.totalorder (!%p1169_p12), %s1394_s26, 0 }
  0x4f   : > { %994 = dma.done.wait (%p1399_p6), %s214_s11, 1024  }
  0x50   : > { %996 = vsyncadd (%p1399_p6), %s214_s11, 4294966272  ;;  %s223_s29 = scalar_lea.sflag [#allocation6], %s1216_s10  ;;  %s226_s13 = scalar_lea.vmem [#allocation5], %s1219_s30 }
  0x51   : > { %998 = dma.done.wait (%p1399_p6), %s223_s29, 1024  }
  0x52   : > { %1000 = vsyncadd (%p1399_p6), %s223_s29, 4294966272  ;;  %v1235_v0 = vld [vmem:[%s226_s13] sm:$0xff]  ;;  %v1237_v1 = vld [vmem:[%s226_s13 + $0x8] sm:$0xff]  ;;  %v1025_v27 = vmov 0.0|0.0   ;;  %vm1026_vm0 = vmmov 0   ;;  %v1027_v31 = vmov 0.0   ;;  %v316_v33 = vlaneseq }
  0x53   : > { %v1240_v2 = vld [vmem:[%s1223_s23] sm:$0xff]  ;;  %v288_v3 = vadd.f32 %v1237_v1, %v1235_v0  ;;  %v1245_v4 = vld [vmem:[%s1223_s23 + $0x8] sm:$0xff]  ;;  %v1247_v5 = vld [vmem:[%s226_s13 + $0x10] sm:$0xff]  ;;  %819 = vmatprep.subr.bf16.mxu0 %v1025_v27  ;;  %806 = vmatprep.mubr.msk.f32.mxu0 %vm1026_vm0, %v1027_v31  ;;  %vm327_vm1 = vcmask 130112   ;;  %vm334_vm2 = vcmask 195712   ;;  %vm341_vm3 = vcmask 261312  }
  0x54   : > { %v1249_v6 = vld [vmem:[%s226_s13 + $0x18] sm:$0xff]  ;;  %v264_v7 = vadd.f32 %v1245_v4, %v1240_v2  ;;  %v1254_v8 = vld [vmem:[%s1223_s23 + $0x10] sm:$0xff]  ;;  %v1263_v12 = vld [vmem:[%s226_s13 + $0x20] sm:$0xff]  ;;  %809 = vmatprep.subr.mxu1 %v1027_v31  ;;  %811 = vmatprep.mubr.msk.f32.mxu1 %vm1026_vm0, %v1027_v31  ;;  %v317_v35 = vand.u32 127, %v316_v33  ;;  %v1305_v41 = vshrl.u32 %v316_v33, 7  ;;  %vm343_vm4 = vcmask 261120  }
  0x55   : > { %v1257_v9 = vld [vmem:[%s1223_s23 + $0x18] sm:$0xff]  ;;  %289 = vadd.xlane.f32.xlu1 %v288_v3  ;;  %v291_v10 = vadd.f32 %v1249_v6, %v1247_v5  ;;  %v1265_v13 = vld [vmem:[%s226_s13 + $0x28] sm:$0xff]  ;;  %v1268_v14 = vld [vmem:[%s1223_s23 + $0x20] sm:$0xff]  ;;  %vm422_vm5 = vcmask 1043456   ;;  %vm418_vm6 = vcmask 31744   ;;  %p1400_p1 = scmp.ne.s32.totalorder %s1395_s27, 0 }
  0x56   : > { %265 = vadd.xlane.f32.xlu0 %v264_v7  ;;  %v267_v11 = vadd.f32 %v1257_v9, %v1254_v8  ;;  %v1271_v15 = vld [vmem:[%s1223_s23 + $0x28] sm:$0xff]  ;;  %v294_v16 = vadd.f32 %v1265_v13, %v1263_v12  ;;  %v1277_v18 = vld [vmem:[%s226_s13 + $0x30] sm:$0xff]  ;;  %v1279_v19 = vld [vmem:[%s226_s13 + $0x38] sm:$0xff]  ;;  %v322_v38 = vadd.s32 4294967288, %v317_v35  ;;  %v329_v40 = vadd.s32 4294967280, %v317_v35  ;;  %s1028_s6 = smov [#allocation7]  }
  0x57   : > { %v270_v17 = vadd.f32 %v1271_v15, %v1268_v14  ;;  %v1282_v20 = vld [vmem:[%s1223_s23 + $0x30] sm:$0xff]  ;;  %v1285_v21 = vld [vmem:[%s1223_s23 + $0x38] sm:$0xff]  ;;  %v297_v22 = vadd.f32 %v1279_v19, %v1277_v18  ;;  %v308_v24 = vld [vmem:[%s1388_s2] sm:$0xff]  ;;  %v336_v48 = vadd.s32 4294967272, %v317_v35  ;;  %v320_v50 = vsub.s32 %v317_v35, %v1305_v41  ;;  %s255_s23 = scalar_lea.vmem [#allocation7], %s1219_s30  ;;  %s788_s30 = sshll.u32 %s1077_s19, 10 }
  0x58   : > { %v273_v23 = vadd.f32 %v1285_v21, %v1282_v20  ;;  %v309_v25 = vld [vmem:[%s1388_s2 + $0x8] sm:$0xff]  ;;  %v310_v28 = vld [vmem:[%s1388_s2 + $0x10] sm:$0xff]  ;;  %v311_v29 = vld [vmem:[%s1388_s2 + $0x18] sm:$0xff]  ;;  %v325_v45 = vsub.s32 %v322_v38, %v1305_v41  ;;  %v332_v49 = vsub.s32 %v329_v40, %v1305_v41  ;;  %v583_v35 = vsub.s32 0, %v1305_v41  ;;  %s666_s29 = sshll.u32 %s255_s23, 4  ;;  %s1340_s20 = scalar_lea.hbm %s1390_s4, %s788_s30  ;;  %s1342_s29 = int_to_ptr.vmem [resolvable:$true] %s666_s29 }
  0x59   : > { %292 = vadd.xlane.f32.xlu1 %v291_v10  ;;  %v820_v26 = vpack.c.bf16 %v309_v25, %v308_v24  ;;  %v823_v30 = vpack.c.bf16 %v311_v29, %v310_v28  ;;  %v339_v56 = vsub.s32 %v336_v48, %v1305_v41  ;;  %v417_v7 = vld [vmem:[%s1389_s3] sm:$0xf]  ;;  %s653_s19 = scalar_lea.sflag [#allocation4], %s1216_s10  ;;  %s949_s22 = scalar_lea.vmem %s1342_s29, 1024 }
  0x5a   : > { %268 = vadd.xlane.f32.xlu0 %v267_v11  ;;  %810 = vmatpush3.msk.msra.mxu1 %vm422_vm5, %v417_v7  ;;  %p950_p13 = scmp.ne.s32.totalorder %s1342_s29, %s949_s22  ;;  %s953_s9 = sshll.u32 %s1028_s6, 4  ;;  %s954_s9 = int_to_ptr.vmem [resolvable:$false] %s953_s9 }
  0x5b   : > { %821 = vmatpush3.bf16.msra.mxu0 %v820_v26  ;;  %814 = vmatprep.subr.mxu1 %v1027_v31  ;;  %s955_s8 = scalar_lea.vmem %s954_s9, 2048  ;;  %p956_p5 = scmp.lt.s32.totalorder %s1342_s29, %s954_s9 }
  0x5c   : > { %822 = vmatprep.subr.bf16.mxu0 %v1025_v27  ;;  %p951_p12 = pnand %p950_p13, %p1400_p1  ;;  %p957_p7 = scmp.lt.s32.totalorder %s955_s8, %s949_s22 }
  0x5d   : > { %295 = vadd.xlane.f32.xlu1 %v294_v16 }
  0x5e   : > { %271 = vadd.xlane.f32.xlu0 %v270_v17  ;;  %v778_v17 = vld [vmem:[%s1389_s3 + $0x4] sm:$0xf]  ;;  %p952_p10 = pneg %p951_p12  ;;  %p958_p9 = por %p957_p7, %p956_p5 }
  0x5f   : > { %824 = vmatpush3.bf16.msra.mxu0 %v823_v30 }
  0x60   : > { %p959_p11 = pnand %p958_p9, %p952_p10 }
  0x61   : > { %298 = vadd.xlane.f32.xlu1 %v297_v22 }
  0x62   : > { %274 = vadd.xlane.f32.xlu0 %v273_v23 }
  0xe2   : > { %v290_v32 = vpop.xlane.xlu1 %289 }
  0xe3   : > { %v266_v34 = vpop.xlane.xlu0 %265 }
  0xe4   : > { %v300_v42 = vadd.f32 %v290_v32, %v266_v34 }
  0xe6   : > { %v293_v36 = vpop.xlane.xlu1 %292  ;;  %v304_v51 = vmul.f32 0.00390625, %v300_v42 }
  0xe7   : > { %v269_v37 = vpop.xlane.xlu0 %268 }
  0xe8   : > { %v301_v39 = vadd.f32 %v293_v36, %v269_v37  ;;  %v321_v59 = vrot.slane %v304_v51, %v320_v50 }
  0xea   : > { %v296_v43 = vpop.xlane.xlu1 %295  ;;  %v305_v46 = vmul.f32 0.00390625, %v301_v39 }
  0xeb   : > { %v272_v44 = vpop.xlane.xlu0 %271 }
  0xec   : > { %v302_v47 = vadd.f32 %v296_v43, %v272_v44  ;;  %v326_v55 = vrot.slane %v305_v46, %v325_v45 }
  0xee   : > { %v306_v52 = vmul.f32 0.00390625, %v302_v47  ;;  %v299_v53 = vpop.xlane.xlu1 %298  ;;  %v328_v61 = vsel %vm327_vm1, %v326_v55, %v321_v59 }
  0xef   : > { %v275_v54 = vpop.xlane.xlu0 %274 }
  0xf0   : > { %v303_v57 = vadd.f32 %v299_v53, %v275_v54  ;;  %v333_v58 = vrot.slane %v306_v52, %v332_v49 }
  0xf2   : > { %v307_v60 = vmul.f32 0.00390625, %v303_v57  ;;  %v335_v63 = vsel %vm334_vm2, %v333_v58, %v328_v61 }
  0xf4   : > { %v340_v62 = vrot.slane %v307_v60, %v339_v56 }
  0xf6   : > { %v342_v3 = vsel %vm341_vm3, %v340_v62, %v335_v63 }
  0xf7   : > { %807 = vmatmul.mubr.msk.f32.vlgmr.msra.gmra.mrb[0].mxu0 %vm343_vm4, %v342_v3 }
 0x1ca   : > { %v412_v10 = vpop.f32.mrb[0].mxu0 }
 0x1cb   : > { %v416_v11 = vmax.f32 %v412_v10, 0.0  ;;  %v808_v16 = vpop.f32.mrb[1].mxu0 }
 0x1cd   : > { %812 = vmatmul.mubr.msk.f32.vlgmr.msra.gmra.mrb[0].mxu1 %vm418_vm6, %v416_v11 }
 0x1ce   : > { %815 = vmatpush3.msk.msra.mxu1 %vm422_vm5, %v778_v17  ;;  %816 = vmatprep.mubr.msk.f32.mxu1 %vm1026_vm0, %v1027_v31 }
 0x1d1   : > { %817 = vmatmul.mubr.msk.f32.vlgmr.msra.gmra.mrb[2].mxu1 %vm418_vm6, %v416_v11 }
 0x2a0   : > { %v492_v22 = vpop.f32.mrb[0].mxu1 }
 0x2a1   : > { %v813_v23 = vpop.f32.mrb[1].mxu1 }
 0x2a4   : > { %v567_v24 = vpop.f32.mrb[2].mxu1 }
 0x2a5   : > { %v571_v25 = vmax.f32 %v492_v22, %v567_v24  ;;  %v818_v26 = vpop.f32.mrb[3].mxu1 }
 0x2a7   : > { %v572_v27 = vsub.f32 %v492_v22, %v571_v25  ;;  %v575_v28 = vsub.f32 %v567_v24, %v571_v25 }
 0x2a9   : > { %v573_v29 = vmul.f32 1.442695, %v572_v27  ;;  %v576_v30 = vmul.f32 1.442695, %v575_v28 }
 0x2ab   : > { %883 = vpow2.f32 %v573_v29 }
 0x2ac   : > { %885 = vpow2.f32 %v576_v30 }
 0x2b5   : > { %v884_v32 = vpop.eup %883 }
 0x2b6   : > { %v886_v33 = vpop.eup %885 }
 0x2b7   : > { %v578_v34 = vadd.f32 %v886_v33, %v884_v32 }
 0x2b9   : > { %887 = vrcp.f32 %v578_v34 }
 0x2c3   : > { %v888_v36 = vpop.eup %887 }
 0x2c4   : > { %v580_v31 = vmul.f32 %v888_v36, %v884_v32  ;;  %v600_v37 = vmul.f32 %v888_v36, %v886_v33 }
 0x2c6   : > { %v584_v38 = vrot.slane %v580_v31, %v583_v35  ;;  %v604_v39 = vrot.slane %v600_v37, %v583_v35 }
 0x2c8   : > { %590 = vbcast.lane.b32.xlu1 %v584_v38, 264  ;;  %586 = vbcast.lane.b32.xlu0 %v584_v38, 256 }
 0x2cc   : > { %594 = vbcast.lane.b32.xlu1 %v584_v38, 272  ;;  %606 = vbcast.lane.b32.xlu0 %v604_v39, 256 }
 0x2d0   : > { %598 = vbcast.lane.b32.xlu1 %v584_v38, 280  ;;  %614 = vbcast.lane.b32.xlu0 %v604_v39, 272 }
 0x2d4   : > { %610 = vbcast.lane.b32.xlu1 %v604_v39, 264 }
 0x2d8   : > { %618 = vbcast.lane.b32.xlu1 %v604_v39, 280 }
 0x33a   : > { %v591_v40 = vpop.permute.xlu1 %590  ;;  %v587_v42 = vpop.permute.xlu0 %586 }
 0x33b   : > { %v620_v41 = vmul.f32 %v587_v42, %v1240_v2  ;;  %v621_v45 = vmul.f32 %v587_v42, %v1245_v4  ;;  %v623_v56 = vmul.f32 %v591_v40, %v1257_v9 }
 0x33e   : > { %v595_v43 = vpop.permute.xlu1 %594  ;;  %v607_v44 = vpop.permute.xlu0 %606 }
 0x33f   : > { %v628_v46 = vmul.f32 %v607_v44, %v1235_v0  ;;  %v629_v47 = vmul.f32 %v607_v44, %v1237_v1  ;;  %v624_v52 = vmul.f32 %v595_v43, %v1268_v14  ;;  %v625_v53 = vmul.f32 %v595_v43, %v1271_v15 }
 0x340   : > { %v622_v1 = vmul.f32 %v591_v40, %v1254_v8 }
 0x341   : > { %v636_v48 = vadd.f32 %v628_v46, %v620_v41  ;;  %v637_v49 = vadd.f32 %v629_v47, %v621_v45 }
 0x342   : > { %v599_v50 = vpop.permute.xlu1 %598  ;;  %v615_v51 = vpop.permute.xlu0 %614 }
 0x343   : > { %644 = vst [vmem:[%s255_s23] sm:$0xff] %v636_v48  ;;  %645 = vst [vmem:[%s255_s23 + $0x8] sm:$0xff] %v637_v49  ;;  %v632_v2 = vmul.f32 %v615_v51, %v1263_v12  ;;  %v633_v4 = vmul.f32 %v615_v51, %v1265_v13  ;;  %v626_v13 = vmul.f32 %v599_v50, %v1282_v20 }
 0x344   : > { %v627_v59 = vmul.f32 %v599_v50, %v1285_v21 }
 0x345   : > { %v640_v54 = vadd.f32 %v632_v2, %v624_v52  ;;  %v641_v0 = vadd.f32 %v633_v4, %v625_v53 }
 0x346   : > { %v611_v55 = vpop.permute.xlu1 %610 }
 0x347   : > { %648 = vst [vmem:[%s255_s23 + $0x20] sm:$0xff] %v640_v54  ;;  %649 = vst [vmem:[%s255_s23 + $0x28] sm:$0xff] %v641_v0  ;;  %v630_v14 = vmul.f32 %v611_v55, %v1247_v5  ;;  %v631_v15 = vmul.f32 %v611_v55, %v1249_v6 }
 0x349   : > { %v638_v57 = vadd.f32 %v630_v14, %v622_v1  ;;  %v639_v58 = vadd.f32 %v631_v15, %v623_v56 }
 0x34a   : > { %v619_v12 = vpop.permute.xlu1 %618 }
 0x34b   : > { %646 = vst [vmem:[%s255_s23 + $0x10] sm:$0xff] %v638_v57  ;;  %647 = vst [vmem:[%s255_s23 + $0x18] sm:$0xff] %v639_v58  ;;  %v634_v8 = vmul.f32 %v619_v12, %v1277_v18  ;;  %v635_v9 = vmul.f32 %v619_v12, %v1279_v19 }
 0x34d   : > { %v642_v5 = vadd.f32 %v634_v8, %v626_v13  ;;  %v643_v6 = vadd.f32 %v635_v9, %v627_v59 }
 0x34f   : > { %650 = vst [vmem:[%s255_s23 + $0x30] sm:$0xff] %v642_v5  ;;  %651 = vst [vmem:[%s255_s23 + $0x38] sm:$0xff] %v643_v6 }
 0x350   : > { %962 = shalt.err (!%p959_p11)
}
 0x351   : > { %s963_s25 = scalar_lea.hbm %s1340_s20, 1024  ;;  %s967_s12 = scalar_lea.hbm %s1390_s4, 2048 }
 0x352   : > { %p964_p3 = scmp.ne.s32.totalorder %s1340_s20, %s963_s25  ;;  %p968_p2 = scmp.lt.u32.totalorder %s1340_s20, %s1390_s4 }
 0x353   : > { %p969_p4 = scmp.lt.u32.totalorder %s967_s12, %s963_s25  ;;  %p971_p13 = scmp.lt.u32.totalorder %s963_s25, %s1340_s20 }
 0x354   : > { %p965_p8 = pnand %p964_p3, %p1400_p1 }
 0x355   : > { %p970_p6 = por %p969_p4, %p968_p2 }
 0x356   : > { %p966_p0 = pneg %p965_p8 }
 0x357   : > { %p972_p12 = por %p971_p13, %p970_p6 }
 0x359   : > { %p973_p10 = pnand %p972_p12, %p966_p0 }
 0x35b   : > { %976 = shalt.err (!%p973_p10)
}
 0x35c   : > { %s1029_s23 = smov 256   ;;  %s1030_s30 = smov 16  }
 0x35d   : > { %829 = dma.vmem_to_hbm [thread:$0]  (%p1400_p1), %s1342_s29, 1024, %s1340_s20, %s653_s19, %s1029_s23, %s1029_s23, %s1030_s30  }
 0x35e PF: > { %s681_s13 = sand.u32 1, %s1007_s15   ;;  %p1401_p5 = scmp.ne.s32.totalorder %s1396_s28, 0 }
 0x35f   : > { %p1402_p7 = scmp.ge.s32.totalorder %s1019_s18, 2  ;;  %s682_s26 = scalar_lea.sflag [#allocation4], %s681_s13 }
 0x361   : > { %p839_p9 = pnand %p1402_p7, %p1401_p5 }
 0x363   : > { %1002 = dma.done.wait (!%p839_p9), %s682_s26, 1024  }
 0x364   : > { %1004 = vsyncadd (!%p839_p9), %s682_s26, 4294966272  ;;  %p20_p11 = scmp.ge.s32.totalorder %s1081_s21, 4   ;;  %s1403_s15 = smov %s1011_s16 }
 0x365   : > { %s1404_s16 = smov %s1015_s17  ;;  %s1405_s17 = smov %s1093_s24 }
 0x366   : > { %s1406_s18 = smov %s1081_s21  ;;  %22 = sbr.rel (!%p20_p11) target bundleno = 7 (0x7), region = 95 }
 0x36d   :  { %687 = vsyncpa [#allocation3], 1 }
 0x36e   :  { %689 = vsyncpa [#allocation3 + $0x1], 1 }
 0x36f   :  { %690 = vsyncpa [#allocation6], 1 }
 0x370   :  { %692 = vsyncpa [#allocation6 + $0x1], 1 }
 0x371   :  { %693 = vsyncpa [#allocation4], 1 }
 0x372   :  { %695 = vsyncpa [#allocation4 + $0x1], 1 }

</bundles_post_ra>
